<compile_context>
chip_gen: v7x
topology: tpu7x:2x2x1
jax: 0.10.0
libtpu: 0.0.40
codegen_flags: <defaults>
</compile_context>

<pallas_src>
import numpy as np
import jax
import jax.numpy as jnp
from jax.experimental import pallas as pl
from jax.experimental.pallas import tpu as pltpu


def _stft_matmul_kernel(frames_ref, basis_ref, out_ref):
    # One (TM, K) tile of windowed frames x resident (K, F2p) DFT basis on the MXU.
    out_ref[...] = jnp.dot(
        frames_ref[...], basis_ref[...], preferred_element_type=jnp.float32
    )


def _round_up(x: int, m: int) -> int:
    return ((x + m - 1) // m) * m


def _make_windowed_dft_basis_np(n_fft: int, lane_multiple: int = 128) -> np.ndarray:
    """Hann-window-folded onesided real-DFT basis, lane-padded to a 128 multiple.

    basis[:, :F]  = hann[n] *  cos(2*pi*(n*f mod n_fft)/n_fft)
    basis[:, F:2F]= hann[n] * -sin(2*pi*(n*f mod n_fft)/n_fft)
    basis[:, 2F:] = 0   (lane padding)
    Built in float64 on host (angle reduced mod n_fft), cast to float32.
    """
    n_freq = n_fft // 2 + 1
    n = np.arange(n_fft, dtype=np.float64)
    # torch.hann_window default is periodic=True: w[n] = 0.5*(1 - cos(2*pi*n/n_fft))
    w = 0.5 - 0.5 * np.cos(2.0 * np.pi * n / n_fft)
    f = np.arange(n_freq, dtype=np.float64)
    nf_mod = np.mod(n[:, None] * f[None, :], float(n_fft))      # keep angle small
    ang = 2.0 * np.pi * nf_mod / n_fft
    cos_b = w[:, None] * np.cos(ang)                             # (n_fft, n_freq)
    sin_b = -w[:, None] * np.sin(ang)                            # (n_fft, n_freq)
    basis = np.concatenate([cos_b, sin_b], axis=1)               # (n_fft, 2*n_freq)
    f2 = 2 * n_freq
    f2p = _round_up(f2, lane_multiple)
    if f2p > f2:
        basis = np.pad(basis, ((0, 0), (0, f2p - f2)))
    return basis.astype(np.float32)


class PallasSTFT:
    """Pallas replacement for TorchSTFT.forward (torch.stft, return_complex=True)."""

    def __init__(self, n_fft: int, hop_length: int, tile_m: int = 256):
        self.n_fft = n_fft
        self.hop_length = hop_length
        self.n_freq = n_fft // 2 + 1
        self.tile_m = tile_m
        # Deterministic "parameters": window folded into a lane-padded DFT basis.
        self.basis = jnp.asarray(_make_windowed_dft_basis_np(n_fft))
        self.f2_padded = int(self.basis.shape[1])                 # multiple of 128

    def __call__(self, x: jnp.ndarray) -> jnp.ndarray:
        # x: (B, T) float32  ->  (B, n_freq, n_frames) complex64
        assert x.ndim == 2, "expected (batch, time) input"
        x = x.astype(jnp.float32)
        B, T = x.shape
        n_fft, hop, n_freq = self.n_fft, self.hop_length, self.n_freq
        pad = n_fft // 2

        # center=True with reflect padding (torch.stft default pad_mode).
        x_pad = jnp.pad(x, ((0, 0), (pad, pad)), mode="reflect")
        T_pad = T + 2 * pad
        n_frames = 1 + (T_pad - n_fft) // hop

        # Frame extraction (JAX glue).
        # TODO(synk): move this overlap expansion into the kernel via manual DMA
        # of the contiguous signal window to avoid the n_fft/hop HBM inflation.
        idx = (jnp.arange(n_frames)[:, None] * hop
               + jnp.arange(n_fft)[None, :])                      # (n_frames, n_fft)
        frames = x_pad[:, idx].reshape(B * n_frames, n_fft)       # (M, K)

        M, K = frames.shape
        F2p = self.f2_padded

        # Tile M; pad with zero rows so every tile is full (sliced off later).
        TM = min(self.tile_m, _round_up(M, 8))
        M_pad = _round_up(M, TM)
        if M_pad > M:
            frames = jnp.pad(frames, ((0, M_pad - M), (0, 0)))
        num_tiles = M_pad // TM

        # VMEM budget: double-buffered frames + resident basis + double-buffered out.
        vmem_need = 4 * (2 * TM * K + K * F2p + 2 * TM * F2p)
        vmem_limit = max(32 * 1024 * 1024, int(vmem_need * 2))

        cost = pl.CostEstimate(
            flops=2 * M_pad * K * F2p,
            transcendentals=0,
            bytes_accessed=4 * (M_pad * K + K * F2p + M_pad * F2p),
        )

        out = pl.pallas_call(
            _stft_matmul_kernel,
            out_shape=jax.ShapeDtypeStruct((M_pad, F2p), jnp.float32),
            grid=(num_tiles,),
            in_specs=[
                pl.BlockSpec((TM, K), lambda i: (i, 0)),          # frames tile
                pl.BlockSpec((K, F2p), lambda i: (0, 0)),         # basis, resident
            ],
            out_specs=pl.BlockSpec((TM, F2p), lambda i: (i, 0)),  # lane-dense output
            compiler_params=pltpu.CompilerParams(
                dimension_semantics=("parallel",),
                vmem_limit_bytes=vmem_limit,
            ),
            cost_estimate=cost,
        )(frames, self.basis)

        out = out[:M]                                             # drop row padding
        real = out[:, :n_freq].reshape(B, n_frames, n_freq)
        imag = out[:, n_freq:2 * n_freq].reshape(B, n_frames, n_freq)
        spec = (real + 1j * imag).astype(jnp.complex64)
        # torch.stft returns (B, n_freq, n_frames)
        return jnp.transpose(spec, (0, 2, 1))


def _reference_stft_numpy(x, n_fft, hop):
    # Pure numpy reference replicating torch.stft semantics (float64).
    x = np.asarray(x, dtype=np.float64)
    B, T = x.shape
    pad = n_fft // 2
    xp = np.pad(x, ((0, 0), (pad, pad)), mode="reflect")
    n_frames = 1 + (xp.shape[1] - n_fft) // hop
    n = np.arange(n_fft, dtype=np.float64)
    w = 0.5 - 0.5 * np.cos(2.0 * np.pi * n / n_fft)               # periodic hann
    frames = np.stack(
        [xp[:, t * hop: t * hop + n_fft] for t in range(n_frames)], axis=1
    )                                                             # (B, n_frames, n_fft)
    spec = np.fft.rfft(frames * w[None, None, :], axis=-1)        # (B, n_frames, n_freq)
    return np.transpose(spec, (0, 2, 1))                          # (B, n_freq, n_frames)


if __name__ == "__main__":
    n_fft = 16
    hop_length = 4
    B, T = 2, 64

    key = jax.random.PRNGKey(0)
    x = jax.random.normal(key, (B, T), dtype=jnp.float32)

    stft = PallasSTFT(n_fft, hop_length)
    y = stft(x)
    y = jax.block_until_ready(y)

    # sanity check against float64 numpy reference
    ref = _reference_stft_numpy(np.asarray(x), n_fft, hop_length)
    assert y.shape == ref.shape, (y.shape, ref.shape)
    np.testing.assert_allclose(np.asarray(y), ref, rtol=1e-4, atol=1e-4)

    print("KERNEL_OK")
</pallas_src>

<mosaic_0001>
module attributes {stable_mosaic.version = 11 : i64} {
  func.func @_stft_matmul_kernel(%arg0: i32, %arg1: memref<40x16xf32, #tpu.memory_space<vmem>>, %arg2: memref<16x128xf32, #tpu.memory_space<vmem>>, %arg3: memref<40x128xf32, #tpu.memory_space<vmem>>) attributes {dimension_semantics = [#tpu.dimension_semantics<parallel>], iteration_bounds = array<i64: 1>, scalar_prefetch = 0 : i64, scratch_operands = 0 : i64, tpu.core_type = #tpu.core_type<tc>, window_params = [{transform_indices = @transform_0, window_bounds = array<i64: 40, 16>}, {pipeline_mode = #tpu.pipeline_mode<synchronous>, transform_indices = @transform_1, window_bounds = array<i64: 16, 128>}, {transform_indices = @transform_2, window_bounds = array<i64: 40, 128>}]} {
    %c0 = arith.constant 0 : index
    %c0_0 = arith.constant 0 : index
    %0 = vector.load %arg1[%c0, %c0_0] : memref<40x16xf32, #tpu.memory_space<vmem>>, vector<40x16xf32>
    %c0_1 = arith.constant 0 : index
    %c0_2 = arith.constant 0 : index
    %1 = vector.load %arg2[%c0_1, %c0_2] : memref<16x128xf32, #tpu.memory_space<vmem>>, vector<16x128xf32>
    %cst = arith.constant dense<0.000000e+00> : vector<40x128xf32>
    %2 = tpu.matmul %0, %1, %cst {dimension_numbers = #tpu.dot_dimension_numbers<[1], [0], [0], [1], [0, 0, 1, 1], [], []>} : vector<40x16xf32>, vector<16x128xf32>, vector<40x128xf32> -> vector<40x128xf32>
    %c0_3 = arith.constant 0 : index
    %c0_4 = arith.constant 0 : index
    %3 = vector.load %arg3[%c0_3, %c0_4] : memref<40x128xf32, #tpu.memory_space<vmem>>, vector<40x128xf32>
    tpu.vector_store %arg3[%c0_3, %c0_4], %2 {strides = array<i32>} : memref<40x128xf32, #tpu.memory_space<vmem>>, vector<40x128xf32>,
    return
  }
  func.func @transform_0(%arg0: i32) -> (i32, i32) {
    %c0_i32 = arith.constant 0 : i32
    %c0_i32_0 = arith.constant 0 : i32
    return %arg0, %c0_i32 : i32, i32
  }
  func.func @transform_1(%arg0: i32) -> (i32, i32) {
    %c0_i32 = arith.constant 0 : i32
    %c0_i32_0 = arith.constant 0 : i32
    %c0_i32_1 = arith.constant 0 : i32
    return %c0_i32, %c0_i32_0 : i32, i32
  }
  func.func @transform_2(%arg0: i32) -> (i32, i32) {
    %c0_i32 = arith.constant 0 : i32
    %c0_i32_0 = arith.constant 0 : i32
    return %arg0, %c0_i32 : i32, i32
  }
}

</mosaic_0001>

<bundles_post_ra>
// kernel: tpu_custom_call.1
= control target key start
LH: loop header
LB: loop body
LE: loop exit
PB: predicated region body
PF: predicated region fallthrough
CT: control target
= control target key end

     0   :  { %v212_v2 = vmov 0.0|0.0   ;;  %vm213_vm0 = vmmov 0   ;;  %v214_v4 = vmov 0.0   ;;  %s271_s0 = inlined_call_operand.vmem [shape: f32[40,16], index: 0, kind: input, shape index: {}]   ;;  %s272_s1 = inlined_call_operand.vmem [shape: f32[16,128], index: 1, kind: input, shape index: {}]   ;;  %s273_s2 = inlined_call_operand.hbm [shape: f32[40,128], index: 2, kind: output, shape index: {}]  }
   0x1   :  { %v17_v0 = vld [vmem:[%s272_s1] sm:$0xff]  ;;  %v18_v1 = vld [vmem:[%s272_s1 + $0x8] sm:$0xff]  ;;  %177 = vmatprep.subr.bf16.mxu0 %v212_v2  ;;  %180 = vmatprep.subr.bf16.mxu1 %v212_v2 }
   0x2   :  { %v178_v3 = vpack.c.bf16 %v18_v1, %v17_v0  ;;  %162 = vmatprep.mubr.msk.f32.mxu0 %vm213_vm0, %v214_v4  ;;  %171 = vmatprep.mubr.msk.f32.mxu1 %vm213_vm0, %v214_v4 }
   0x3   :  { %7 = vsyncpa [#allocation3], 0  ;;  %v12_v5 = vld [vmem:[%s271_s0] sm:$0xff]  ;;  %vm19_vm1 = vcmask 130048   ;;  %v15_v6 = vld [vmem:[%s271_s0 + $0x18] sm:$0xff]  ;;  %s215_s22 = smov [#allocation2]  }
   0x4   :  { %179 = vmatpush3.bf16.msra.mxu0 %v178_v3  ;;  %181 = vmatpush3.bf16.msra.mxu1 %v178_v3  ;;  %v13_v7 = vld [vmem:[%s271_s0 + $0x8] sm:$0xff]  ;;  %v16_v8 = vld [vmem:[%s271_s0 + $0x20] sm:$0xff]  ;;  %v14_v9 = vld [vmem:[%s271_s0 + $0x10] sm:$0xff]  ;;  %s135_s23 = sshll.u32 %s215_s22, 4  ;;  %s136_s23 = int_to_ptr.vmem [resolvable:$true] %s135_s23 }
   0x5   :  { %s188_s0 = scalar_lea.vmem %s136_s23, 640  ;;  %p193_p1 = scmp.lt.s32.totalorder %s136_s23, %s136_s23 }
   0x6   :  { %p189_p0 = scmp.ne.s32.totalorder %s136_s23, %s188_s0  ;;  %p194_p2 = scmp.lt.s32.totalorder %s188_s0, %s188_s0 }
   0x7   :  { %163 = vmatmul.mubr.msk.f32.vlgmr.msra.gmra.mrb[0].mxu0 %vm19_vm1, %v12_v5  ;;  %172 = vmatmul.mubr.msk.f32.vlgmr.msra.gmra.mrb[0].mxu1 %vm19_vm1, %v15_v6 }
   0x8   :  { %165 = vmatprep.mubr.msk.f32.mxu0 %vm213_vm0, %v214_v4  ;;  %174 = vmatprep.mubr.msk.f32.mxu1 %vm213_vm0, %v214_v4  ;;  %p195_p3 = por %p194_p2, %p193_p1 }
   0xa   :  { %p196_p4 = pnand %p195_p3, %p189_p0 }
   0xb   :  { %166 = vmatmul.mubr.msk.f32.gmra.mrb[2].mxu0 %vm19_vm1, %v13_v7  ;;  %175 = vmatmul.mubr.msk.f32.gmra.mrb[2].mxu1 %vm19_vm1, %v16_v8 }
   0xc   :  { %168 = vmatprep.mubr.msk.f32.mxu0 %vm213_vm0, %v214_v4 }
   0xf   :  { %169 = vmatmul.mubr.msk.f32.gmra.mrb[4].mxu0 %vm19_vm1, %v14_v9 }
  0xda   :  { %v101_v10 = vpop.f32.mrb[0].mxu0  ;;  %v116_v11 = vpop.f32.mrb[0].mxu1 }
  0xdb   :  { %125 = vst [vmem:[#allocation2] sm:$0xff] %v101_v10  ;;  %v164_v12 = vpop.f32.mrb[1].mxu0  ;;  %128 = vst [vmem:[#allocation2 + $0x18] sm:$0xff] %v116_v11  ;;  %v173_v13 = vpop.f32.mrb[1].mxu1 }
  0xde   :  { %v106_v14 = vpop.f32.mrb[2].mxu0  ;;  %v121_v15 = vpop.f32.mrb[2].mxu1 }
  0xdf   :  { %126 = vst [vmem:[#allocation2 + $0x8] sm:$0xff] %v106_v14  ;;  %v167_v16 = vpop.f32.mrb[3].mxu0  ;;  %129 = vst [vmem:[#allocation2 + $0x20] sm:$0xff] %v121_v15  ;;  %v176_v17 = vpop.f32.mrb[3].mxu1 }
  0xe2   :  { %v111_v18 = vpop.f32.mrb[4].mxu0 }
  0xe3   :  { %127 = vst [vmem:[#allocation2 + $0x10] sm:$0xff] %v111_v18  ;;  %v170_v19 = vpop.f32.mrb[5].mxu0 }
  0xe4   :  { %199 = shalt.err (!%p196_p4)
}
  0xe5   :  { %s200_s26 = scalar_lea.hbm %s273_s2, 640 }
  0xe6   :  { %p201_p5 = scmp.ne.s32.totalorder %s273_s2, %s200_s26  ;;  %p204_p6 = scmp.lt.u32.totalorder %s200_s26, %s273_s2 }
  0xe8   :  { %p206_p7 = pnand %p204_p6, %p201_p5 }
  0xea   :  { %209 = shalt.err (!%p206_p7)
}
  0xeb   :  { %s216_s3 = smov 128   ;;  %s217_s4 = smov 8  }
  0xec   :  { %141 = dma.vmem_to_hbm [thread:$0]  %s136_s23, 640, %s273_s2, [#allocation3], %s216_s3, %s216_s3, %s217_s4  }
  0xed   :  { %210 = dma.done.wait [#allocation3], 640  }
  0xee   :  { %211 = vsyncadd [#allocation3], 4294966656 }
  0xef   :  { %145 = vsyncpa [#allocation3], 1 }

</bundles_post_ra>
